<compile_context>
chip_gen: v7x
topology: tpu7x:2x2x1
jax: 0.10.0
libtpu: 0.0.40
codegen_flags: <defaults>
</compile_context>

<pallas_src>
import functools

import jax
import jax.numpy as jnp
from jax.experimental import pallas as pl
from jax.experimental.pallas import tpu as pltpu


def _round_up(x, m):
    return (x + m - 1) // m * m


def _pick_tile(dim_pad, max_tile, base):
    """Largest tile <= max_tile that is a multiple of `base` and divides dim_pad."""
    t = min(max_tile, dim_pad)
    t = max((t // base) * base, base)
    while dim_pad % t:
        t -= base
    return t


def _pad2d(a, rows, cols, dtype):
    a = a.astype(dtype)
    if a.shape == (rows, cols):
        return a
    return jnp.pad(a, ((0, rows - a.shape[0]), (0, cols - a.shape[1])))


# ----------------------------------------------------------------------------
# Pallas kernel: tiled GEMM (f32 accumulate) + per-channel affine + activation
# ----------------------------------------------------------------------------
def _gemm_fused_kernel(x_ref, w_ref, scale_ref, shift_ref, o_ref, acc_ref, *, act):
    k = pl.program_id(2)

    @pl.when(k == 0)
    def _():
        acc_ref[...] = jnp.zeros_like(acc_ref)

    acc_ref[...] += jnp.dot(x_ref[...], w_ref[...],
                            preferred_element_type=jnp.float32)

    @pl.when(k == pl.num_programs(2) - 1)
    def _():
        y = acc_ref[...] * scale_ref[...] + shift_ref[...]
        if act == "lrelu":
            y = jnp.where(y > 0, y, 0.2 * y)
        elif act == "sigmoid":
            y = jax.nn.sigmoid(y)
        o_ref[...] = y.astype(o_ref.dtype)


def gemm_fused(x, wp, sp, bp, act, n_out, out_dtype=jnp.bfloat16):
    """y = act((x @ W) * scale + shift).

    `wp` is the pre-padded bf16 weight [K_pad, N_pad]; `sp`/`bp` are the
    pre-padded fp32 scale/shift [1, N_pad]. `x` is [M, K] (any float dtype);
    returns [M, n_out] in `out_dtype`.
    """
    M, K = x.shape
    K_pad, N_pad = wp.shape
    assert K <= K_pad and n_out <= N_pad

    M_pad = _round_up(M, 8)
    tm = _pick_tile(M_pad, 256, 8)
    tn = _pick_tile(N_pad, 256, 128)
    tk = _pick_tile(K_pad, 512, 128)

    xp = _pad2d(x, M_pad, K_pad, jnp.bfloat16)

    out = pl.pallas_call(
        functools.partial(_gemm_fused_kernel, act=act),
        out_shape=jax.ShapeDtypeStruct((M_pad, N_pad), out_dtype),
        grid_spec=pltpu.PrefetchScalarGridSpec(
            num_scalar_prefetch=0,
            grid=(M_pad // tm, N_pad // tn, K_pad // tk),
            in_specs=[
                pl.BlockSpec((tm, tk), lambda i, j, k: (i, k)),
                pl.BlockSpec((tk, tn), lambda i, j, k: (k, j)),
                pl.BlockSpec((1, tn), lambda i, j, k: (0, j)),
                pl.BlockSpec((1, tn), lambda i, j, k: (0, j)),
            ],
            out_specs=pl.BlockSpec((tm, tn), lambda i, j, k: (i, j)),
            scratch_shapes=[pltpu.VMEM((tm, tn), jnp.float32)],
        ),
        compiler_params=pltpu.CompilerParams(
            dimension_semantics=("parallel", "parallel", "arbitrary"),
            vmem_limit_bytes=48 << 20,
        ),
    )(xp, wp, sp, bp)
    return out[:M, :n_out]


# ----------------------------------------------------------------------------
# JAX glue: im2col patch extraction (kernel=3, pad=1, arbitrary stride), bf16
# ----------------------------------------------------------------------------
def im2col(x_nhwc, stride):
    n, h, w, c = x_nhwc.shape
    ho = (h + 2 - 3) // stride + 1
    wo = (w + 2 - 3) // stride + 1
    xp = jnp.pad(x_nhwc, ((0, 0), (1, 1), (1, 1), (0, 0)))
    cols = []
    for kh in range(3):
        for kw in range(3):
            patch = xp[:, kh:kh + stride * (ho - 1) + 1:stride,
                       kw:kw + stride * (wo - 1) + 1:stride, :]
            cols.append(patch)
    cols = jnp.concatenate(cols, axis=-1)          # [n, ho, wo, 9*c]
    return cols.reshape(n * ho * wo, 9 * c), (n, ho, wo)


# ----------------------------------------------------------------------------
# Deterministic parameter initialization (PyTorch-shaped weights)
# ----------------------------------------------------------------------------
def init_params(key, crop_size):
    # (cin, cout, stride, has_bn)
    specs = [(3, 64, 1, False), (64, 64, 2, True)]
    layer_channel_size = [64, 128, 128, 256, 256, 512, 512]
    stride_size = [1, 2] * 3
    for cin, cout, st in zip(layer_channel_size, layer_channel_size[1:],
                             stride_size):
        specs.append((cin, cout, st, True))

    params = {"conv": []}
    for cin, cout, st, has_bn in specs:
        key, k1, k2, k3, k4, k5, k6 = jax.random.split(key, 7)
        w = 0.05 * jax.random.normal(k1, (cout, cin, 3, 3), jnp.float32)
        b = 0.05 * jax.random.normal(k2, (cout,), jnp.float32)
        if has_bn:
            gamma = 1.0 + 0.1 * jax.random.normal(k3, (cout,), jnp.float32)
            beta = 0.1 * jax.random.normal(k4, (cout,), jnp.float32)
            mean = 0.1 * jax.random.normal(k5, (cout,), jnp.float32)
            var = 1.0 + 0.1 * jax.random.uniform(k6, (cout,), jnp.float32)
        else:
            gamma = beta = mean = var = None
        params["conv"].append(dict(w=w, b=b, gamma=gamma, beta=beta,
                                   mean=mean, var=var, stride=st))

    num_down = 4
    fc_in = int(512 * (crop_size / 2 ** num_down) ** 2)
    key, k1, k2, k3, k4 = jax.random.split(key, 5)
    params["fc1_w"] = 0.02 * jax.random.normal(k1, (1024, fc_in), jnp.float32)
    params["fc1_b"] = 0.02 * jax.random.normal(k2, (1024,), jnp.float32)
    params["fc2_w"] = 0.02 * jax.random.normal(k3, (1, 1024), jnp.float32)
    params["fc2_b"] = 0.02 * jax.random.normal(k4, (1,), jnp.float32)
    return params


# ----------------------------------------------------------------------------
# Prepare GEMM-ready parameters once: bf16 padded weights, fp32 scale/shift
# ----------------------------------------------------------------------------
def prepare_params(params):
    eps = 1e-5
    prepared = {"conv": []}
    for p in params["conv"]:
        cout, cin = p["w"].shape[0], p["w"].shape[1]
        # [Cout,Cin,3,3] -> [3,3,Cin,Cout] -> [9*Cin, Cout] (matches im2col order)
        w_mat = jnp.transpose(p["w"], (2, 3, 1, 0)).reshape(9 * cin, cout)
        if p["gamma"] is not None:
            inv = p["gamma"] / jnp.sqrt(p["var"] + eps)
            scale = inv
            shift = (p["b"] - p["mean"]) * inv + p["beta"]
        else:
            scale = jnp.ones((cout,), jnp.float32)
            shift = p["b"]
        K, N = w_mat.shape
        K_pad, N_pad = _round_up(K, 128), _round_up(N, 128)
        prepared["conv"].append(dict(
            w=_pad2d(w_mat, K_pad, N_pad, jnp.bfloat16),
            scale=_pad2d(scale.reshape(1, N), 1, N_pad, jnp.float32),
            shift=_pad2d(shift.reshape(1, N), 1, N_pad, jnp.float32),
            stride=p["stride"], n_out=N,
        ))

    fc1_w = params["fc1_w"].T                       # [fc_in, 1024]
    K, N = fc1_w.shape
    K_pad, N_pad = _round_up(K, 128), _round_up(N, 128)
    prepared["fc1_w"] = _pad2d(fc1_w, K_pad, N_pad, jnp.bfloat16)
    prepared["fc1_scale"] = _pad2d(jnp.ones((1, N), jnp.float32), 1, N_pad,
                                   jnp.float32)
    prepared["fc1_shift"] = _pad2d(params["fc1_b"].reshape(1, N), 1, N_pad,
                                   jnp.float32)
    prepared["fc1_n"] = N
    prepared["fc2_w"] = params["fc2_w"].astype(jnp.float32)    # [1, 1024]
    prepared["fc2_b"] = params["fc2_b"].astype(jnp.float32)    # [1]
    return prepared


# ----------------------------------------------------------------------------
# Forward pass
# ----------------------------------------------------------------------------
def srgan_discriminator_forward(prepared, x_nchw):
    x = jnp.transpose(x_nchw, (0, 2, 3, 1)).astype(jnp.bfloat16)   # NCHW -> NHWC

    for p in prepared["conv"]:
        cols, (n, ho, wo) = im2col(x, p["stride"])
        y = gemm_fused(cols, p["w"], p["scale"], p["shift"],
                       act="lrelu", n_out=p["n_out"], out_dtype=jnp.bfloat16)
        x = y.reshape(n, ho, wo, p["n_out"])

    # torch.flatten(out, start_dim=1) on NCHW -> flatten in (C, H, W) order
    n, ho, wo, c = x.shape
    flat = jnp.transpose(x, (0, 3, 1, 2)).reshape(n, c * ho * wo)

    h = gemm_fused(flat, prepared["fc1_w"], prepared["fc1_scale"],
                   prepared["fc1_shift"], act="lrelu",
                   n_out=prepared["fc1_n"], out_dtype=jnp.bfloat16)

    # FC2 (N=1) is launch-overhead dominated in Pallas; compute in fp32 jnp so
    # the sigmoid stays strictly inside (0, 1).
    logits = h.astype(jnp.float32) @ prepared["fc2_w"].T + prepared["fc2_b"]
    return jax.nn.sigmoid(logits)                    # [N, 1], values in (0, 1)


if __name__ == "__main__":
    crop_size = 16          # must be divisible by 16 (4 stride-2 layers)
    batch = 2
    key = jax.random.PRNGKey(0)
    kp, kx = jax.random.split(key)

    params = init_params(kp, crop_size)
    prepared = prepare_params(params)
    x = jax.random.normal(kx, (batch, 3, crop_size, crop_size), jnp.float32)

    out = srgan_discriminator_forward(prepared, x)
    out = jax.block_until_ready(out)

    assert out.shape == (batch, 1)
    assert bool(jnp.all((out > 0.0) & (out < 1.0)))
    print("KERNEL_OK")
</pallas_src>

<mosaic_0001>
module attributes {stable_mosaic.version = 11 : i64} {
  func.func @_gemm_fused_kernel(%arg0: i32, %arg1: i32, %arg2: i32, %arg3: memref<256x128xbf16, #tpu.memory_space<vmem>>, %arg4: memref<128x128xbf16, #tpu.memory_space<vmem>>, %arg5: memref<1x128xf32, #tpu.memory_space<vmem>>, %arg6: memref<1x128xf32, #tpu.memory_space<vmem>>, %arg7: memref<256x128xbf16, #tpu.memory_space<vmem>>, %arg8: memref<256x128xf32, #tpu.memory_space<vmem>>) attributes {dimension_semantics = [#tpu.dimension_semantics<parallel>, #tpu.dimension_semantics<parallel>, #tpu.dimension_semantics<arbitrary>], iteration_bounds = array<i64: 2, 1, 1>, scalar_prefetch = 0 : i64, scratch_operands = 1 : i64, tpu.core_type = #tpu.core_type<tc>, window_params = [{transform_indices = @transform_0, window_bounds = array<i64: 256, 128>}, {transform_indices = @transform_1, window_bounds = array<i64: 128, 128>}, {transform_indices = @transform_2, window_bounds = array<i64: 1, 128>}, {transform_indices = @transform_3, window_bounds = array<i64: 1, 128>}, {transform_indices = @transform_4, window_bounds = array<i64: 256, 128>}]} {
    %c0_i32 = arith.constant 0 : i32
    %0 = arith.cmpi eq, %arg2, %c0_i32 : i32
    %1 = arith.extui %0 : i1 to i32
    %c0_i32_0 = arith.constant 0 : i32
    %2 = arith.cmpi ne, %1, %c0_i32_0 : i32
    scf.if %2 {
      %cst_10 = arith.constant 0.000000e+00 : f32
      %12 = vector.broadcast %cst_10 : f32 to vector<256x128xf32>
      %c0_11 = arith.constant 0 : index
      %c0_12 = arith.constant 0 : index
      %13 = vector.load %arg8[%c0_11, %c0_12] : memref<256x128xf32, #tpu.memory_space<vmem>>, vector<256x128xf32>
      tpu.vector_store %arg8[%c0_11, %c0_12], %12 {strides = array<i32>} : memref<256x128xf32, #tpu.memory_space<vmem>>, vector<256x128xf32>,
    } else {
    }
    %c0 = arith.constant 0 : index
    %c0_1 = arith.constant 0 : index
    %3 = vector.load %arg8[%c0, %c0_1] : memref<256x128xf32, #tpu.memory_space<vmem>>, vector<256x128xf32>
    %c0_2 = arith.constant 0 : index
    %c0_3 = arith.constant 0 : index
    %4 = vector.load %arg3[%c0_2, %c0_3] : memref<256x128xbf16, #tpu.memory_space<vmem>>, vector<256x128xbf16>
    %c0_4 = arith.constant 0 : index
    %c0_5 = arith.constant 0 : index
    %5 = vector.load %arg4[%c0_4, %c0_5] : memref<128x128xbf16, #tpu.memory_space<vmem>>, vector<128x128xbf16>
    %cst = arith.constant dense<0.000000e+00> : vector<256x128xf32>
    %6 = tpu.matmul %4, %5, %cst {dimension_numbers = #tpu.dot_dimension_numbers<[1], [0], [0], [1], [0, 0, 1, 1], [], []>} : vector<256x128xbf16>, vector<128x128xbf16>, vector<256x128xf32> -> vector<256x128xf32>
    %7 = arith.addf %3, %6 : vector<256x128xf32>
    %c0_6 = arith.constant 0 : index
    %c0_7 = arith.constant 0 : index
    %8 = vector.load %arg8[%c0_6, %c0_7] : memref<256x128xf32, #tpu.memory_space<vmem>>, vector<256x128xf32>
    tpu.vector_store %arg8[%c0_6, %c0_7], %7 {strides = array<i32>} : memref<256x128xf32, #tpu.memory_space<vmem>>, vector<256x128xf32>,
    %c0_i32_8 = arith.constant 0 : i32
    %9 = arith.cmpi eq, %arg2, %c0_i32_8 : i32
    %10 = arith.extui %9 : i1 to i32
    %c0_i32_9 = arith.constant 0 : i32
    %11 = arith.cmpi ne, %10, %c0_i32_9 : i32
    scf.if %11 {
      %c0_10 = arith.constant 0 : index
      %c0_11 = arith.constant 0 : index
      %12 = vector.load %arg8[%c0_10, %c0_11] : memref<256x128xf32, #tpu.memory_space<vmem>>, vector<256x128xf32>
      %c0_12 = arith.constant 0 : index
      %c0_13 = arith.constant 0 : index
      %13 = vector.load %arg5[%c0_12, %c0_13] : memref<1x128xf32, #tpu.memory_space<vmem>>, vector<1x128xf32>
      %14 = vector.broadcast %13 : vector<1x128xf32> to vector<256x128xf32>
      %15 = arith.mulf %12, %14 : vector<256x128xf32>
      %c0_14 = arith.constant 0 : index
      %c0_15 = arith.constant 0 : index
      %16 = vector.load %arg6[%c0_14, %c0_15] : memref<1x128xf32, #tpu.memory_space<vmem>>, vector<1x128xf32>
      %17 = vector.broadcast %16 : vector<1x128xf32> to vector<256x128xf32>
      %18 = arith.addf %15, %17 : vector<256x128xf32>
      %cst_16 = arith.constant 0.000000e+00 : f32
      %19 = vector.broadcast %cst_16 : f32 to vector<256x128xf32>
      %20 = arith.cmpf ogt, %18, %19 : vector<256x128xf32>
      %cst_17 = arith.constant 2.000000e-01 : f32
      %21 = vector.broadcast %cst_17 : f32 to vector<256x128xf32>
      %22 = arith.mulf %21, %18 : vector<256x128xf32>
      %23 = arith.select %20, %18, %22 : vector<256x128xi1>, vector<256x128xf32>
      %24 = arith.truncf %23 : vector<256x128xf32> to vector<256x128xbf16>
      %c0_18 = arith.constant 0 : index
      %c0_19 = arith.constant 0 : index
      %25 = vector.load %arg7[%c0_18, %c0_19] : memref<256x128xbf16, #tpu.memory_space<vmem>>, vector<256x128xbf16>
      tpu.vector_store %arg7[%c0_18, %c0_19], %24 {strides = array<i32>} : memref<256x128xbf16, #tpu.memory_space<vmem>>, vector<256x128xbf16>,
    } else {
    }
    return
  }
  func.func @transform_0(%arg0: i32, %arg1: i32, %arg2: i32) -> (i32, i32) {
    %c0_i32 = arith.constant 0 : i32
    return %arg0, %arg2 : i32, i32
  }
  func.func @transform_1(%arg0: i32, %arg1: i32, %arg2: i32) -> (i32, i32) {
    %c0_i32 = arith.constant 0 : i32
    return %arg2, %arg1 : i32, i32
  }
  func.func @transform_2(%arg0: i32, %arg1: i32, %arg2: i32) -> (i32, i32) {
    %c0_i32 = arith.constant 0 : i32
    %c0_i32_0 = arith.constant 0 : i32
    return %c0_i32, %arg1 : i32, i32
  }
  func.func @transform_3(%arg0: i32, %arg1: i32, %arg2: i32) -> (i32, i32) {
    %c0_i32 = arith.constant 0 : i32
    %c0_i32_0 = arith.constant 0 : i32
    return %c0_i32, %arg1 : i32, i32
  }
  func.func @transform_4(%arg0: i32, %arg1: i32, %arg2: i32) -> (i32, i32) {
    %c0_i32 = arith.constant 0 : i32
    return %arg0, %arg1 : i32, i32
  }
}

</mosaic_0001>

<bundles_post_ra>
// kernel: tpu_custom_call.1
= control target key start
LH: loop header
LB: loop body
LE: loop exit
PB: predicated region body
PF: predicated region fallthrough
CT: control target
= control target key end

     0   :  { %9 = vsyncpa [#allocation4], 0  ;;  %s2209_s0 = inlined_call_operand.hbm [shape: bf16[512,128], index: 0, kind: input, shape index: {}]   ;;  %s2210_s1 = inlined_call_operand.hbm [shape: bf16[128,128], index: 1, kind: input, shape index: {}]   ;;  %s2211_s2 = inlined_call_operand.vmem [shape: f32[1,128], index: 2, kind: input, shape index: {}]   ;;  %s2212_s3 = inlined_call_operand.vmem [shape: f32[1,128], index: 3, kind: input, shape index: {}]   ;;  %s2213_s4 = inlined_call_operand.hbm [shape: bf16[512,128], index: 4, kind: output, shape index: {}]  }
   0x1   :  { %11 = vsyncpa [#allocation4 + $0x1], 0 }
   0x2   :  { %12 = vsyncpa [#allocation7], 0 }
   0x3   :  { %13 = vsyncpa [#allocation5], 0 }
   0x4   :  { %15 = vsyncpa [#allocation5 + $0x1], 0  ;;  %s1866_s15 = smov 0   ;;  %s1868_s16 = smov 0  }
   0x5   :  { %s1870_s17 = smov 0   ;;  %s1872_s18 = smov 0  }
   0x6   :  { %s1874_s19 = smov 0   ;;  %s1876_s20 = smov 0  }
   0x7 LB: > { %s1293_s21 = sadd.s32 4294967295, %s1832_s20   ;;  %s1294_s22 = sadd.s32 4294967294, %s1832_s20   ;;  %s1832_s20 = sphi %s1876_s20, %s21_s20   ;;  %s1828_s19 = sphi %s1874_s19, %s2237_s19   ;;  %s1824_s18 = sphi %s1872_s18, %s2236_s18   ;;  %s1820_s17 = sphi %s1870_s17, %s2235_s17   ;;  %s1816_s16 = sphi %s1868_s16, %s2234_s16   ;;  %s1812_s15 = sphi %s1866_s15, %s2233_s15  }
   0x8   : > { %p62_p0 = scmp.ne.s32.totalorder %s1816_s16, %s1812_s15  ;;  %p1900_p1 = scmp.eq.s32.totalorder %s1293_s21, 0 }
   0x9   : > { %p1904_p2 = scmp.eq.s32.totalorder %s1293_s21, 1  ;;  %p174_p3 = scmp.eq.s32.totalorder %s1294_s22, 1 }
   0xa   : > { %s2218_s23 = scalar_select %p1900_p1, 1, 0 }
   0xb   : > { %s2219_s24 = scalar_select %p1904_p2, 1, 0 }
   0xc   : > { %p1910_p4 = por %p1900_p1, %p62_p0  ;;  %p1295_p5 = scmp.ge.s32.totalorder %s1832_s20, 1 }
   0xd   : > { %p1915_p6 = por %p174_p3, %p62_p0  ;;  %p181_p7 = scmp.lt.s32.totalorder %s1832_s20, 3 }
   0xe   : > { %s2220_s25 = scalar_select %p1910_p4, 1, 0 }
   0xf   : > { %s2221_s26 = scalar_select %p1915_p6, 1, 0 }
  0x10   : > { %p1920_p8 = pnand %p1295_p5, %p181_p7  ;;  %s1834_s28 = smov [#allocation6]  }
  0x11   : > { %s197_s29 = sshll.u32 %s1834_s28, 4  ;;  %s40_s5 = sadd.s32 1, %s1828_s19  ;;  %s198_s29 = int_to_ptr.vmem [resolvable:$true] %s197_s29 }
  0x12   : > { %s2222_s27 = scalar_select %p1920_p8, 1, 0 }
  0x13   : > { %p1595_p9 = pneg %p1920_p8  ;;  %s1688_s8 = scalar_lea.hbm %s2210_s1, 1024 }
  0x14   : > { %p1689_p12 = scmp.ne.s32.totalorder %s2210_s1, %s1688_s8  ;;  %p1695_p5 = scmp.lt.u32.totalorder %s1688_s8, %s2210_s1 }
  0x15   : > { %p1929_p11 = pnand %p1595_p9, %p1900_p1 }
  0x17   : > { %p1690_p13 = pneg %p1929_p11 }
  0x19   : > { %p1691_p0 = pnand %p1690_p13, %p1689_p12 }
  0x1b   : > { %p1692_p3 = pneg %p1691_p0 }
  0x1d   : > { %p1697_p7 = pnand %p1695_p5, %p1692_p3 }
  0x1f   : > { %1700 = shalt.err (!%p1697_p7)
}
  0x20   : > { %s1701_s13 = scalar_lea.vmem %s198_s29, 1024  ;;  %p1709_p1 = scmp.lt.s32.totalorder %s198_s29, %s198_s29 }
  0x21   : > { %p1702_p9 = scmp.ne.s32.totalorder %s198_s29, %s1701_s13  ;;  %p1710_p4 = scmp.lt.s32.totalorder %s1701_s13, %s1701_s13 }
  0x23   : > { %p1704_p10 = pnand %p1702_p9, %p1690_p13  ;;  %p1711_p8 = por %p1710_p4, %p1709_p1 }
  0x25   : > { %p1705_p6 = pneg %p1704_p10 }
  0x27   : > { %p1712_p2 = pnand %p1711_p8, %p1705_p6 }
  0x29   : > { %1715 = shalt.err (!%p1712_p2)
}
  0x2a   : > { %s1835_s14 = smov 64   ;;  %s1836_s21 = smov 4  }
  0x2b   : > { %1598 = dma.hbm_to_vmem [thread:$0]  (!%p1929_p11), %s2210_s1, 1024, %s198_s29, [#allocation7], %s1835_s14, %s1835_s14, %s1836_s21  }
  0x2c   : > { %p42_p1 = scmp.ge.s32.totalorder %s40_s5, 2  ;;  %s49_s6 = sadd.s32 1, %s1820_s17 }
  0x2d   : > { %p56_p2 = scmp.ne.s32.totalorder %s1820_s17, %s1816_s16  ;;  %p57_p4 = scmp.eq.s32.totalorder %s1832_s20, 0 }
  0x2e   : > { %s2239_s5 = smov (%p42_p1, %s40_s5), 0  ;;  %p2225_p8 = scmp.ne.s32.totalorder %s2219_s24, 0 }
  0x2f   : > { %p1959_p6 = por %p57_p4, %p56_p2  ;;  %s44_s8 = ssub.s32 %s1828_s19, %s2239_s5 }
  0x30   : > { %p1965_p10 = por %p2225_p8, %p56_p2  ;;  %p1608_p12 = scmp.lt.s32.totalorder %s1832_s20, 2 }
  0x31   : > { %p47_p11 = scmp.eq.s32.totalorder %s44_s8, 0  ;;  %s223_s29 = sand.u32 1, %s1820_s17  }
  0x32   : > { %s1300_s9 = sshll.u32 %s223_s29, 7  ;;  %s1370_s11 = sshll.u32 %s1828_s19, 11 }
  0x33   : > { %s1974_s10 = scalar_select %p47_p11, %s1820_s17, %s49_s6  }
  0x34   : > { %s1980_s22 = scalar_lea.hbm %s2209_s0, %s1370_s11  ;;  %s227_s24 = scalar_lea.vmem [#allocation3], %s1300_s9 }
  0x35   : > { %s235_s28 = sshll.u32 %s227_s24, 4  ;;  %p1986_p13 = pnand %p1608_p12, %p1959_p6  ;;  %s1982_s28 = int_to_ptr.vmem [resolvable:$true] %s235_s28 }
  0x36   : > { %s1990_s6 = scalar_lea.sflag [#allocation4], %s223_s29  ;;  %s1716_s12 = scalar_lea.hbm %s1980_s22, 2048 }
  0x37   : > { %p1717_p0 = scmp.ne.s32.totalorder %s1980_s22, %s1716_s12  ;;  %p1718_p3 = pneg %p1986_p13 }
  0x38   : > { %s1721_s7 = scalar_lea.hbm %s2209_s0, 4096  ;;  %p1722_p9 = scmp.lt.u32.totalorder %s1980_s22, %s2209_s0 }
  0x39   : > { %p1719_p5 = pnand %p1718_p3, %p1717_p0  ;;  %p1723_p1 = scmp.lt.u32.totalorder %s1721_s7, %s1716_s12 }
  0x3a   : > { %p1725_p4 = scmp.lt.u32.totalorder %s1716_s12, %s1980_s22 }
  0x3b   : > { %p1720_p7 = pneg %p1719_p5  ;;  %p1724_p2 = por %p1723_p1, %p1722_p9 }
  0x3d   : > { %p1726_p6 = por %p1725_p4, %p1724_p2 }
  0x3f   : > { %p1727_p8 = pnand %p1726_p6, %p1720_p7 }
  0x41   : > { %1730 = shalt.err (!%p1727_p8)
}
  0x42   : > { %s1731_s29 = scalar_lea.vmem %s1982_s28, 2048  ;;  %s1837_s9 = smov [#allocation3]  }
  0x43   : > { %p1732_p12 = scmp.ne.s32.totalorder %s1982_s28, %s1731_s29  ;;  %s1736_s11 = sshll.u32 %s1837_s9, 4  ;;  %s1737_s11 = int_to_ptr.vmem [resolvable:$false] %s1736_s11 }
  0x44   : > { %s1738_s13 = scalar_lea.vmem %s1737_s11, 4096  ;;  %p1739_p5 = scmp.lt.s32.totalorder %s1982_s28, %s1737_s11 }
  0x45   : > { %p1734_p11 = pnand %p1732_p12, %p1718_p3  ;;  %p1740_p9 = scmp.lt.s32.totalorder %s1738_s13, %s1731_s29 }
  0x47   : > { %p1735_p0 = pneg %p1734_p11  ;;  %p1741_p1 = por %p1740_p9, %p1739_p5 }
  0x49   : > { %p1742_p2 = pnand %p1741_p1, %p1735_p0 }
  0x4b   : > { %1745 = shalt.err (!%p1742_p2)
}
  0x4c   : > { %1602 = dma.hbm_to_vmem [thread:$0]  (!%p1986_p13), %s1980_s22, 2048, %s1982_s28, %s1990_s6, %s1835_s14, %s1835_s14, %s1836_s21  }
  0x4d   : > { %p2228_p3 = scmp.ne.s32.totalorder %s2222_s27, 0 }
  0x4e   : > { %s2024_s12 = sand.u32 (!%p2228_p3), 1, %s1816_s16   ;;  %p2229_p7 = scmp.ne.s32.totalorder (!%p2228_p3), %s2220_s25, 0 }
  0x4f   : > { %247 = sbr.rel (%p2228_p3) target bundleno = 399 (0x18f), region = 36  ;;  %s1304_s7 = sshll.u32 (!%p2228_p3), %s2024_s12, 7 }
  0x50   : > { %s250_s24 = scalar_lea.sflag (!%p2228_p3), [#allocation4], %s2024_s12  ;;  %s2030_s8 = scalar_lea.vmem (!%p2228_p3), [#allocation3], %s1304_s7 }
  0x56   : > { %1799 = dma.done.wait (%p2229_p7), %s250_s24, 2048  }
  0x57   : > { %1801 = vsyncadd (%p2229_p7), %s250_s24, 4294965248  ;;  %p2230_p13 = scmp.ne.s32.totalorder %s2218_s23, 0 }
  0x59   : > { %1803 = dma.done.wait (%p2230_p13), [#allocation7], 1024  }
  0x5a   : > { %1805 = vsyncadd (%p2230_p13), [#allocation7], 4294966272  ;;  %v1664_v0 = vld [vmem:[#allocation6] sm:$0xff]   ;;  %v1665_v1 = vld [vmem:[#allocation6 + $0x8] sm:$0xff]   ;;  %s2088_s21 = scalar_lea.vmem [#allocation8], %s1304_s7  ;;  %s1403_s22 = sshll.u32 %s1824_s18, 11 }
  0x5b   : > { %1523 = vmatprep.subr.bf16.mxu0 %v1664_v0  ;;  %1571 = vmatprep.subr.bf16.mxu1 %v1664_v0  ;;  %v1666_v2 = vld [vmem:[#allocation6 + $0x10] sm:$0xff]   ;;  %v1667_v3 = vld [vmem:[#allocation6 + $0x18] sm:$0xff]   ;;  %v1672_v4 = vld [vmem:[%s2030_s8] sm:$0xff]   ;;  %s1167_s28 = sshll.u32 %s2088_s21, 4  ;;  %s2156_s9 = scalar_lea.hbm %s2213_s4, %s1403_s22  ;;  %s2158_s28 = int_to_ptr.vmem [resolvable:$true] %s1167_s28 }
  0x5c   : > { %1524 = vmatpush3.bf16.msra.mxu0 %v1664_v0  ;;  %1579 = vmatpush3.bf16.msra.mxu1 %v1664_v0  ;;  %v1673_v5 = vld [vmem:[%s2030_s8 + $0x40] sm:$0xff]   ;;  %v1669_v7 = vld [vmem:[#allocation6 + $0x28] sm:$0xff]   ;;  %v1670_v8 = vld [vmem:[#allocation6 + $0x30] sm:$0xff]   ;;  %s1153_s18 = scalar_lea.sflag [#allocation5], %s2024_s12  ;;  %s1746_s11 = scalar_lea.vmem %s2158_s28, 2048 }
  0x5d   : > { %1525 = vmatprep.subr.bf16.mxu0 %v1665_v1  ;;  %1572 = vmatprep.subr.bf16.mxu1 %v1665_v1  ;;  %v1668_v6 = vld [vmem:[#allocation6 + $0x20] sm:$0xff]   ;;  %v1671_v9 = vld [vmem:[#allocation6 + $0x38] sm:$0xff]   ;;  %v1674_v10 = vld [vmem:[%s2030_s8 + $0x8] sm:$0xff]   ;;  %p1747_p4 = scmp.ne.s32.totalorder %s2158_s28, %s1746_s11  ;;  %s1838_s13 = smov [#allocation8]  }
  0x5e   : > { %1539 = vmatprep.mubr.bf16.mxu0 %v1672_v4  ;;  %1555 = vmatprep.mubr.bf16.mxu1 %v1673_v5  ;;  %v1675_v11 = vld [vmem:[%s2030_s8 + $0x48] sm:$0xff]   ;;  %v1676_v12 = vld [vmem:[%s2030_s8 + $0x10] sm:$0xff]   ;;  %v1678_v14 = vld [vmem:[%s2030_s8 + $0x18] sm:$0xff]   ;;  %s1750_s7 = sshll.u32 %s1838_s13, 4  ;;  %s1751_s7 = int_to_ptr.vmem [resolvable:$false] %s1750_s7 }
  0x5f   : > { %v1677_v13 = vld [vmem:[%s2030_s8 + $0x50] sm:$0xff]   ;;  %v1679_v15 = vld [vmem:[%s2030_s8 + $0x58] sm:$0xff]   ;;  %v1680_v16 = vld [vmem:[%s2030_s8 + $0x20] sm:$0xff]   ;;  %p1748_p6 = pnand %p1747_p4, %p1965_p10  ;;  %s1752_s24 = scalar_lea.vmem %s1751_s7, 4096 }
  0x60   : > { %1526 = vmatpush3.bf16.msra.mxu0 %v1665_v1  ;;  %1580 = vmatpush3.bf16.msra.mxu1 %v1665_v1  ;;  %v1681_v17 = vld [vmem:[%s2030_s8 + $0x60] sm:$0xff]   ;;  %v1682_v18 = vld [vmem:[%s2030_s8 + $0x28] sm:$0xff]   ;;  %v1684_v20 = vld [vmem:[%s2030_s8 + $0x30] sm:$0xff]   ;;  %p1753_p12 = scmp.lt.s32.totalorder %s2158_s28, %s1751_s7  ;;  %p1754_p11 = scmp.lt.s32.totalorder %s1752_s24, %s1746_s11 }
  0x61   : > { %1527 = vmatprep.subr.bf16.mxu0 %v1666_v2  ;;  %1573 = vmatprep.subr.bf16.mxu1 %v1666_v2  ;;  %v1683_v19 = vld [vmem:[%s2030_s8 + $0x68] sm:$0xff]   ;;  %v1685_v21 = vld [vmem:[%s2030_s8 + $0x70] sm:$0xff]   ;;  %v1686_v22 = vld [vmem:[%s2030_s8 + $0x38] sm:$0xff]   ;;  %p1749_p8 = pneg %p1748_p6 }
  0x62   : > { %v1687_v23 = vld [vmem:[%s2030_s8 + $0x78] sm:$0xff]   ;;  %v2059_v24 = vld [vmem:[%s2211_s2] ss:$0 sm:$0xff]  ;;  %p1755_p0 = por %p1754_p11, %p1753_p12 }
  0x63   : > { %v2064_v26 = vld [vmem:[%s2212_s3] ss:$0 sm:$0xff] }
  0x64   : > { %1528 = vmatpush3.bf16.msra.mxu0 %v1666_v2  ;;  %1581 = vmatpush3.bf16.msra.mxu1 %v1666_v2  ;;  %p1756_p5 = pnand %p1755_p0, %p1749_p8 }
  0x65   : > { %1529 = vmatprep.subr.bf16.mxu0 %v1667_v3  ;;  %1574 = vmatprep.subr.bf16.mxu1 %v1667_v3 }
  0x68   : > { %1530 = vmatpush3.bf16.msra.mxu0 %v1667_v3  ;;  %1582 = vmatpush3.bf16.msra.mxu1 %v1667_v3 }
  0x69   : > { %1531 = vmatprep.subr.bf16.mxu0 %v1668_v6  ;;  %1575 = vmatprep.subr.bf16.mxu1 %v1668_v6 }
  0x6c   : > { %1532 = vmatpush3.bf16.msra.mxu0 %v1668_v6  ;;  %1583 = vmatpush3.bf16.msra.mxu1 %v1668_v6 }
  0x6d   : > { %1533 = vmatprep.subr.bf16.mxu0 %v1669_v7  ;;  %1576 = vmatprep.subr.bf16.mxu1 %v1669_v7 }
  0x70   : > { %1534 = vmatpush3.bf16.msra.mxu0 %v1669_v7  ;;  %1584 = vmatpush3.bf16.msra.mxu1 %v1669_v7 }
  0x71   : > { %1535 = vmatprep.subr.bf16.mxu0 %v1670_v8  ;;  %1577 = vmatprep.subr.bf16.mxu1 %v1670_v8 }
  0x74   : > { %1536 = vmatpush3.bf16.msra.mxu0 %v1670_v8  ;;  %1585 = vmatpush3.bf16.msra.mxu1 %v1670_v8 }
  0x75   : > { %1537 = vmatprep.subr.bf16.mxu0 %v1671_v9  ;;  %1578 = vmatprep.subr.bf16.mxu1 %v1671_v9 }
  0x78   : > { %1538 = vmatpush3.bf16.msra.mxu0 %v1671_v9  ;;  %1586 = vmatpush3.bf16.msra.mxu1 %v1671_v9 }
  0x7b   : > { %1540 = vmatmul.mubr.bf16.vlgmr.msra.gmra.mrb[0].mxu0 %v1674_v10  ;;  %1556 = vmatmul.mubr.bf16.vlgmr.msra.gmra.mrb[0].mxu1 %v1675_v11 }
  0x7c   : > { %1543 = vmatprep.mubr.bf16.mxu0 %v1676_v12  ;;  %1559 = vmatprep.mubr.bf16.mxu1 %v1677_v13 }
  0x83   : > { %1544 = vmatmul.mubr.bf16.gmra.mrb[4].mxu0 %v1678_v14  ;;  %1560 = vmatmul.mubr.bf16.gmra.mrb[4].mxu1 %v1679_v15 }
  0x84   : > { %1547 = vmatprep.mubr.bf16.mxu0 %v1680_v16  ;;  %1563 = vmatprep.mubr.bf16.mxu1 %v1681_v17 }
  0x8b   : > { %1548 = vmatmul.mubr.bf16.gmra.mrb[8].mxu0 %v1682_v18  ;;  %1564 = vmatmul.mubr.bf16.gmra.mrb[8].mxu1 %v1683_v19 }
  0x8c   : > { %1551 = vmatprep.mubr.bf16.mxu0 %v1684_v20  ;;  %1567 = vmatprep.mubr.bf16.mxu1 %v1685_v21 }
  0x93   : > { %1552 = vmatmul.mubr.bf16.gmra.mrb[12].mxu0 %v1686_v22  ;;  %1568 = vmatmul.mubr.bf16.gmra.mrb[12].mxu1 %v1687_v23 }
 0x14e   : > { %v1541_v25 = vpop.f32.mrb[0].mxu0  ;;  %v1557_v27 = vpop.f32.mrb[0].mxu1 }
 0x14f   : > { %v827_v28 = vmul.f32 %v1541_v25, %v2059_v24  ;;  %v843_v29 = vmul.f32 %v1557_v27, %v2059_v24  ;;  %v592_v30 = vpop.f32.mrb[1].mxu0  ;;  %v656_v31 = vpop.f32.mrb[1].mxu1 }
 0x150   : > { %v825_v32 = vmul.f32 %v2059_v24, %v592_v30  ;;  %v841_v33 = vmul.f32 %v2059_v24, %v656_v31  ;;  %v1542_v34 = vpop.f32.mrb[2].mxu0  ;;  %v1558_v35 = vpop.f32.mrb[2].mxu1 }
 0x151   : > { %v866_v36 = vadd.f32 %v2064_v26, %v827_v28  ;;  %v882_v37 = vadd.f32 %v2064_v26, %v843_v29  ;;  %v828_v38 = vmul.f32 %v1542_v34, %v2059_v24  ;;  %v844_v39 = vmul.f32 %v1558_v35, %v2059_v24  ;;  %v595_v40 = vpop.f32.mrb[3].mxu0  ;;  %v659_v41 = vpop.f32.mrb[3].mxu1 }
 0x152   : > { %v864_v42 = vadd.f32 %v2064_v26, %v825_v32  ;;  %v880_v43 = vadd.f32 %v2064_v26, %v841_v33  ;;  %v826_v44 = vmul.f32 %v2059_v24, %v595_v40  ;;  %v842_v45 = vmul.f32 %v2059_v24, %v659_v41 }
 0x153   : > { %vm898_vm0 = vcmp.gt.f32.partialorder %v866_v36, 0.0  ;;  %v930_v46 = vmul.f32 0.2, %v866_v36  ;;  %vm914_vm1 = vcmp.gt.f32.partialorder %v882_v37, 0.0  ;;  %v946_v47 = vmul.f32 0.2, %v882_v37 }
 0x154   : > { %vm896_vm2 = vcmp.gt.f32.partialorder %v864_v42, 0.0  ;;  %v928_v48 = vmul.f32 0.2, %v864_v42  ;;  %vm912_vm3 = vcmp.gt.f32.partialorder %v880_v43, 0.0  ;;  %v944_v49 = vmul.f32 0.2, %v880_v43 }
 0x155   : > { %v962_v50 = vsel %vm898_vm0, %v866_v36, %v930_v46  ;;  %v978_v51 = vsel %vm914_vm1, %v882_v37, %v946_v47  ;;  %v867_v52 = vadd.f32 %v2064_v26, %v828_v38  ;;  %v883_v53 = vadd.f32 %v2064_v26, %v844_v39 }
 0x156   : > { %v960_v54 = vsel %vm896_vm2, %v864_v42, %v928_v48  ;;  %v976_v55 = vsel %vm912_vm3, %v880_v43, %v944_v49  ;;  %v865_v56 = vadd.f32 %v2064_v26, %v826_v44  ;;  %v881_v57 = vadd.f32 %v2064_v26, %v842_v45  ;;  %v1545_v58 = vpop.f32.mrb[4].mxu0  ;;  %v1561_v59 = vpop.f32.mrb[4].mxu1 }
 0x157   : > { %vm899_vm4 = vcmp.gt.f32.partialorder %v867_v52, 0.0  ;;  %v931_v60 = vmul.f32 0.2, %v867_v52  ;;  %vm915_vm5 = vcmp.gt.f32.partialorder %v883_v53, 0.0  ;;  %v947_v61 = vmul.f32 0.2, %v883_v53 }
 0x158   : > { %vm897_vm6 = vcmp.gt.f32.partialorder %v865_v56, 0.0  ;;  %v929_v62 = vmul.f32 0.2, %v865_v56  ;;  %vm913_vm7 = vcmp.gt.f32.partialorder %v881_v57, 0.0  ;;  %v945_v63 = vmul.f32 0.2, %v881_v57 }
 0x159   : > { %v963_v0 = vsel %vm899_vm4, %v867_v52, %v931_v60  ;;  %v979_v1 = vsel %vm915_vm5, %v883_v53, %v947_v61  ;;  %v831_v2 = vmul.f32 %v1545_v58, %v2059_v24  ;;  %v847_v3 = vmul.f32 %v1561_v59, %v2059_v24  ;;  %v608_v4 = vpop.f32.mrb[5].mxu0  ;;  %v672_v5 = vpop.f32.mrb[5].mxu1 }
 0x15a   : > { %v1412_v6 = vpack.c.bf16 %v963_v0, %v962_v50  ;;  %v1452_v7 = vpack.c.bf16 %v979_v1, %v978_v51  ;;  %v961_v8 = vsel %vm897_vm6, %v865_v56, %v929_v62  ;;  %v977_v9 = vsel %vm913_vm7, %v881_v57, %v945_v63  ;;  %v1546_v10 = vpop.f32.mrb[6].mxu0  ;;  %v1562_v11 = vpop.f32.mrb[6].mxu1 }
 0x15b   : > { %v1407_v12 = vpack.c.bf16 %v961_v8, %v960_v54  ;;  %v1447_v13 = vpack.c.bf16 %v977_v9, %v976_v55  ;;  %v870_v14 = vadd.f32 %v2064_v26, %v831_v2  ;;  %v886_v15 = vadd.f32 %v2064_v26, %v847_v3  ;;  %v611_v16 = vpop.f32.mrb[7].mxu0  ;;  %v675_v17 = vpop.f32.mrb[7].mxu1 }
 0x15c   : > { %1484 = vst [vmem:[%s2088_s21 + $0x8] sm:$0xff] %v1412_v6   ;;  %1492 = vst [vmem:[%s2088_s21 + $0x48] sm:$0xff] %v1452_v7   ;;  %v829_v18 = vmul.f32 %v2059_v24, %v608_v4  ;;  %v845_v19 = vmul.f32 %v2059_v24, %v672_v5  ;;  %v832_v20 = vmul.f32 %v1546_v10, %v2059_v24 }
 0x15d   : > { %v848_v21 = vmul.f32 %v1562_v11, %v2059_v24  ;;  %1408 = vst [vmem:[%s2088_s21] sm:$0xff] %v1407_v12   ;;  %1491 = vst [vmem:[%s2088_s21 + $0x40] sm:$0xff] %v1447_v13   ;;  %vm902_vm8 = vcmp.gt.f32.partialorder %v870_v14, 0.0  ;;  %v934_v22 = vmul.f32 0.2, %v870_v14  ;;  %vm918_vm9 = vcmp.gt.f32.partialorder %v886_v15, 0.0 }
 0x15e   : > { %v950_v23 = vmul.f32 0.2, %v886_v15  ;;  %v868_v25 = vadd.f32 %v2064_v26, %v829_v18  ;;  %v884_v27 = vadd.f32 %v2064_v26, %v845_v19  ;;  %v871_v28 = vadd.f32 %v2064_v26, %v832_v20  ;;  %v1549_v30 = vpop.f32.mrb[8].mxu0  ;;  %v1565_v31 = vpop.f32.mrb[8].mxu1 }
 0x15f   : > { %v887_v29 = vadd.f32 %v2064_v26, %v848_v21  ;;  %v966_v32 = vsel %vm902_vm8, %v870_v14, %v934_v22  ;;  %v830_v34 = vmul.f32 %v2059_v24, %v611_v16  ;;  %v846_v35 = vmul.f32 %v2059_v24, %v675_v17  ;;  %v624_v36 = vpop.f32.mrb[9].mxu0  ;;  %v688_v37 = vpop.f32.mrb[9].mxu1 }
 0x160   : > { %v982_v33 = vsel %vm918_vm9, %v886_v15, %v950_v23  ;;  %vm900_vm10 = vcmp.gt.f32.partialorder %v868_v25, 0.0  ;;  %v932_v38 = vmul.f32 0.2, %v868_v25  ;;  %vm916_vm11 = vcmp.gt.f32.partialorder %v884_v27, 0.0  ;;  %v1550_v46 = vpop.f32.mrb[10].mxu0  ;;  %v1566_v47 = vpop.f32.mrb[10].mxu1 }
 0x161   : > { %v948_v39 = vmul.f32 0.2, %v884_v27  ;;  %vm903_vm12 = vcmp.gt.f32.partialorder %v871_v28, 0.0  ;;  %v935_v40 = vmul.f32 0.2, %v871_v28  ;;  %vm919_vm13 = vcmp.gt.f32.partialorder %v887_v29, 0.0 }
 0x162   : > { %v951_v41 = vmul.f32 0.2, %v887_v29  ;;  %v964_v42 = vsel %vm900_vm10, %v868_v25, %v932_v38  ;;  %v869_v44 = vadd.f32 %v2064_v26, %v830_v34  ;;  %v885_v45 = vadd.f32 %v2064_v26, %v846_v35  ;;  %v627_v52 = vpop.f32.mrb[11].mxu0  ;;  %v691_v53 = vpop.f32.mrb[11].mxu1 }
 0x163   : > { %v980_v43 = vsel %vm916_vm11, %v884_v27, %v948_v39  ;;  %v967_v48 = vsel %vm903_vm12, %v871_v28, %v935_v40  ;;  %v835_v50 = vmul.f32 %v1549_v30, %v2059_v24  ;;  %v851_v51 = vmul.f32 %v1565_v31, %v2059_v24 }
 0x164   : > { %v983_v49 = vsel %vm919_vm13, %v887_v29, %v951_v41  ;;  %v1422_v54 = vpack.c.bf16 %v967_v48, %v966_v32  ;;  %vm901_vm14 = vcmp.gt.f32.partialorder %v869_v44, 0.0  ;;  %v933_v56 = vmul.f32 0.2, %v869_v44 }
 0x165   : > { %v1462_v55 = vpack.c.bf16 %v983_v49, %v982_v33  ;;  %vm917_vm15 = vcmp.gt.f32.partialorder %v885_v45, 0.0  ;;  %v949_v57 = vmul.f32 0.2, %v885_v45  ;;  %v874_v58 = vadd.f32 %v2064_v26, %v835_v50 }
 0x166   : > { %v890_v59 = vadd.f32 %v2064_v26, %v851_v51  ;;  %1486 = vst [vmem:[%s2088_s21 + $0x18] sm:$0xff] %v1422_v54   ;;  %v965_v60 = vsel %vm901_vm14, %v869_v44, %v933_v56  ;;  %v833_v61 = vmul.f32 %v2059_v24, %v624_v36  ;;  %v849_v62 = vmul.f32 %v2059_v24, %v688_v37  ;;  %v1553_v0 = vpop.f32.mrb[12].mxu0  ;;  %v1569_v1 = vpop.f32.mrb[12].mxu1 }
 0x167   : > { %1494 = vst [vmem:[%s2088_s21 + $0x58] sm:$0xff] %v1462_v55   ;;  %v836_v63 = vmul.f32 %v1550_v46, %v2059_v24  ;;  %v1417_v2 = vpack.c.bf16 %v965_v60, %v964_v42  ;;  %v981_v3 = vsel %vm917_vm15, %v885_v45, %v949_v57  ;;  %vm906_vm0 = vcmp.gt.f32.partialorder %v874_v58, 0.0  ;;  %v640_v5 = vpop.f32.mrb[13].mxu0  ;;  %v704_v6 = vpop.f32.mrb[13].mxu1 }
 0x168   : > { %v938_v4 = vmul.f32 0.2, %v874_v58  ;;  %v1457_v7 = vpack.c.bf16 %v981_v3, %v980_v43  ;;  %vm922_vm1 = vcmp.gt.f32.partialorder %v890_v59, 0.0  ;;  %v954_v8 = vmul.f32 0.2, %v890_v59  ;;  %v1554_v10 = vpop.f32.mrb[14].mxu0 }
 0x169   : > { %v872_v9 = vadd.f32 %v2064_v26, %v833_v61  ;;  %v1570_v11 = vpop.f32.mrb[14].mxu1  ;;  %1485 = vst [vmem:[%s2088_s21 + $0x10] sm:$0xff] %v1417_v2   ;;  %v888_v12 = vadd.f32 %v2064_v26, %v849_v62  ;;  %v875_v13 = vadd.f32 %v2064_v26, %v836_v63  ;;  %v852_v14 = vmul.f32 %v1566_v47, %v2059_v24  ;;  %v643_v15 = vpop.f32.mrb[15].mxu0 }
 0x16a   : > { %v707_v16 = vpop.f32.mrb[15].mxu1  ;;  %1493 = vst [vmem:[%s2088_s21 + $0x50] sm:$0xff] %v1457_v7   ;;  %v970_v17 = vsel %vm906_vm0, %v874_v58, %v938_v4  ;;  %v986_v18 = vsel %vm922_vm1, %v890_v59, %v954_v8  ;;  %v834_v19 = vmul.f32 %v2059_v24, %v627_v52  ;;  %v850_v25 = vmul.f32 %v2059_v24, %v691_v53 }
 0x16b   : > { %vm904_vm2 = vcmp.gt.f32.partialorder %v872_v9, 0.0  ;;  %v936_v20 = vmul.f32 0.2, %v872_v9  ;;  %vm907_vm3 = vcmp.gt.f32.partialorder %v875_v13, 0.0  ;;  %v939_v21 = vmul.f32 0.2, %v875_v13 }
 0x16c   : > { %vm920_vm4 = vcmp.gt.f32.partialorder %v888_v12, 0.0  ;;  %v891_v22 = vadd.f32 %v2064_v26, %v852_v14  ;;  %v873_v23 = vadd.f32 %v2064_v26, %v834_v19  ;;  %v952_v27 = vmul.f32 0.2, %v888_v12 }
 0x16d   : > { %v971_v28 = vsel %vm907_vm3, %v875_v13, %v939_v21  ;;  %v839_v29 = vmul.f32 %v1553_v0, %v2059_v24  ;;  %v855_v30 = vmul.f32 %v1569_v1, %v2059_v24  ;;  %v968_v33 = vsel %vm904_vm2, %v872_v9, %v936_v20 }
 0x16e   : > { %v1432_v31 = vpack.c.bf16 %v971_v28, %v970_v17  ;;  %vm923_vm5 = vcmp.gt.f32.partialorder %v891_v22, 0.0  ;;  %v955_v32 = vmul.f32 0.2, %v891_v22  ;;  %vm905_vm6 = vcmp.gt.f32.partialorder %v873_v23, 0.0 }
 0x16f   : > { %v937_v34 = vmul.f32 0.2, %v873_v23  ;;  %v889_v35 = vadd.f32 %v2064_v26, %v850_v25  ;;  %v878_v36 = vadd.f32 %v2064_v26, %v839_v29  ;;  %v894_v38 = vadd.f32 %v2064_v26, %v855_v30 }
 0x170   : > { %1488 = vst [vmem:[%s2088_s21 + $0x28] sm:$0xff] %v1432_v31   ;;  %v987_v37 = vsel %vm923_vm5, %v891_v22, %v955_v32  ;;  %v837_v39 = vmul.f32 %v2059_v24, %v640_v5  ;;  %v840_v40 = vmul.f32 %v1554_v10, %v2059_v24  ;;  %v853_v45 = vmul.f32 %v2059_v24, %v704_v6 }
 0x171   : > { %v1472_v41 = vpack.c.bf16 %v987_v37, %v986_v18  ;;  %v969_v42 = vsel %vm905_vm6, %v873_v23, %v937_v34  ;;  %vm921_vm7 = vcmp.gt.f32.partialorder %v889_v35, 0.0  ;;  %v953_v43 = vmul.f32 0.2, %v889_v35 }
 0x172   : > { %v1427_v44 = vpack.c.bf16 %v969_v42, %v968_v33  ;;  %v984_v46 = vsel %vm920_vm4, %v888_v12, %v952_v27  ;;  %vm910_vm8 = vcmp.gt.f32.partialorder %v878_v36, 0.0  ;;  %v942_v48 = vmul.f32 0.2, %v878_v36 }
 0x173   : > { %1496 = vst [vmem:[%s2088_s21 + $0x68] sm:$0xff] %v1472_v41   ;;  %v985_v47 = vsel %vm921_vm7, %v889_v35, %v953_v43  ;;  %v958_v50 = vmul.f32 0.2, %v894_v38  ;;  %v879_v51 = vadd.f32 %v2064_v26, %v840_v40  ;;  %v856_v52 = vmul.f32 %v1570_v11, %v2059_v24 }
 0x174   : > { %1487 = vst [vmem:[%s2088_s21 + $0x20] sm:$0xff] %v1427_v44   ;;  %v1467_v49 = vpack.c.bf16 %v985_v47, %v984_v46  ;;  %vm926_vm9 = vcmp.gt.f32.partialorder %v894_v38, 0.0  ;;  %v876_v53 = vadd.f32 %v2064_v26, %v837_v39  ;;  %v892_v54 = vadd.f32 %v2064_v26, %v853_v45 }
 0x175   : > { %vm911_vm10 = vcmp.gt.f32.partialorder %v879_v51, 0.0  ;;  %v943_v55 = vmul.f32 0.2, %v879_v51  ;;  %v895_v56 = vadd.f32 %v2064_v26, %v856_v52  ;;  %v974_v57 = vsel %vm910_vm8, %v878_v36, %v942_v48 }
 0x176   : > { %1495 = vst [vmem:[%s2088_s21 + $0x60] sm:$0xff] %v1467_v49   ;;  %v838_v58 = vmul.f32 %v2059_v24, %v643_v15  ;;  %v854_v59 = vmul.f32 %v2059_v24, %v707_v16  ;;  %v990_v60 = vsel %vm926_vm9, %v894_v38, %v958_v50  ;;  %v940_v63 = vmul.f32 0.2, %v876_v53 }
 0x177   : > { %v975_v61 = vsel %vm911_vm10, %v879_v51, %v943_v55  ;;  %vm927_vm11 = vcmp.gt.f32.partialorder %v895_v56, 0.0  ;;  %v959_v62 = vmul.f32 0.2, %v895_v56  ;;  %vm908_vm12 = vcmp.gt.f32.partialorder %v876_v53, 0.0 }
 0x178   : > { %v1442_v0 = vpack.c.bf16 %v975_v61, %v974_v57  ;;  %v877_v1 = vadd.f32 %v2064_v26, %v838_v58  ;;  %v893_v2 = vadd.f32 %v2064_v26, %v854_v59  ;;  %vm924_vm13 = vcmp.gt.f32.partialorder %v892_v54, 0.0 }
 0x179   : > { %v956_v3 = vmul.f32 0.2, %v892_v54  ;;  %v991_v4 = vsel %vm927_vm11, %v895_v56, %v959_v62  ;;  %v972_v7 = vsel %vm908_vm12, %v876_v53, %v940_v63 }
 0x17a   : > { %1490 = vst [vmem:[%s2088_s21 + $0x38] sm:$0xff] %v1442_v0   ;;  %v1482_v5 = vpack.c.bf16 %v991_v4, %v990_v60  ;;  %vm909_vm14 = vcmp.gt.f32.partialorder %v877_v1, 0.0  ;;  %v941_v24 = vmul.f32 0.2, %v877_v1  ;;  %vm925_vm15 = vcmp.gt.f32.partialorder %v893_v2, 0.0 }
 0x17b   : > { %v957_v6 = vmul.f32 0.2, %v893_v2  ;;  %v988_v26 = vsel %vm924_vm13, %v892_v54, %v956_v3 }
 0x17c   : > { %1498 = vst [vmem:[%s2088_s21 + $0x78] sm:$0xff] %v1482_v5   ;;  %v973_v8 = vsel %vm909_vm14, %v877_v1, %v941_v24 }
 0x17d   : > { %v1437_v9 = vpack.c.bf16 %v973_v8, %v972_v7  ;;  %v989_v10 = vsel %vm925_vm15, %v893_v2, %v957_v6 }
 0x17e   : > { %v1477_v11 = vpack.c.bf16 %v989_v10, %v988_v26 }
 0x17f   : > { %1489 = vst [vmem:[%s2088_s21 + $0x30] sm:$0xff] %v1437_v9  }
 0x180   : > { %1497 = vst [vmem:[%s2088_s21 + $0x70] sm:$0xff] %v1477_v11  }
 0x181   : > { %1759 = shalt.err (!%p1756_p5)
}
 0x182   : > { %s1760_s8 = scalar_lea.hbm %s2156_s9, 2048  ;;  %s1764_s27 = scalar_lea.hbm %s2213_s4, 4096 }
 0x183   : > { %p1761_p9 = scmp.ne.s32.totalorder %s2156_s9, %s1760_s8  ;;  %p1765_p3 = scmp.lt.u32.totalorder %s2156_s9, %s2213_s4 }
 0x184   : > { %p1766_p7 = scmp.lt.u32.totalorder %s1764_s27, %s1760_s8  ;;  %p1768_p4 = scmp.lt.u32.totalorder %s1760_s8, %s2156_s9 }
 0x185   : > { %p1762_p1 = pnand %p1761_p9, %p1965_p10 }
 0x186   : > { %p1767_p13 = por %p1766_p7, %p1765_p3 }
 0x187   : > { %p1763_p2 = pneg %p1762_p1 }
 0x188   : > { %p1769_p6 = por %p1768_p4, %p1767_p13 }
 0x18a   : > { %p1770_p8 = pnand %p1769_p6, %p1763_p2 }
 0x18c   : > { %1773 = shalt.err (!%p1770_p8)
}
 0x18d   : > { %s1839_s22 = smov 64   ;;  %s1840_s6 = smov 4  }
 0x18e   : > { %1593 = dma.vmem_to_hbm [thread:$0]  (%p1965_p10), %s2158_s28, 2048, %s2156_s9, %s1153_s18, %s1839_s22, %s1839_s22, %s1840_s6  }
 0x18f PF: > { %s1182_s29 = sand.u32 1, %s1812_s15   ;;  %p2231_p12 = scmp.ne.s32.totalorder %s2221_s26, 0 }
 0x190   : > { %p2232_p11 = scmp.ge.s32.totalorder %s1832_s20, 2  ;;  %s1183_s11 = scalar_lea.sflag [#allocation5], %s1182_s29 }
 0x192   : > { %p1604_p0 = pnand %p2232_p11, %p2231_p12 }
 0x194   : > { %1807 = dma.done.wait (!%p1604_p0), %s1183_s11, 2048  }
 0x195   : > { %1809 = vsyncadd (!%p1604_p0), %s1183_s11, 4294965248  ;;  %s21_s20 = sadd.s32 1, %s1832_s20   ;;  %s2233_s15 = smov %s1816_s16 }
 0x196   : > { %p18_p5 = scmp.ge.s32.totalorder %s21_s20, 4   ;;  %s2234_s16 = smov %s1820_s17 }
 0x197   : > { %s2235_s17 = smov %s1974_s10  ;;  %s2236_s18 = smov %s1828_s19 }
 0x198   : > { %s2237_s19 = smov %s2239_s5  ;;  %20 = sbr.rel (!%p18_p5) target bundleno = 7 (0x7), region = 100 }
 0x19f   :  { %1188 = vsyncpa [#allocation4], 1 }
 0x1a0   :  { %1190 = vsyncpa [#allocation4 + $0x1], 1 }
 0x1a1   :  { %1191 = vsyncpa [#allocation7], 1 }
 0x1a2   :  { %1192 = vsyncpa [#allocation5], 1 }
 0x1a3   :  { %1194 = vsyncpa [#allocation5 + $0x1], 1 }

</bundles_post_ra>
